<compile_context>
chip_gen: v7x
topology: tpu7x:2x2x1
jax: 0.10.0
libtpu: 0.0.40
codegen_flags: <defaults>
</compile_context>

<pallas_src>
import functools
import math

import jax
import jax.numpy as jnp
from jax import lax
from jax.experimental import pallas as pl
from jax.experimental.pallas import tpu as pltpu

EPS = 1e-5


def _residual_block_kernel(x_ref, m_ref, w1_ref, w2_ref, g1_ref, b1_ref,
                           g2_ref, b2_ref, o_ref, patch_ref, *, W):
    # x_ref / o_ref : (Cp, NHW)    f32  -- lane-dense activations
    # m_ref         : (16, NHW)    f32  -- 9 precomputed halo masks (rows 0..8)
    # w*_ref        : (Cp, 9*Cp)   f32  -- tap-major im2col weights
    # g*/b*_ref     : (Cp, 1)      f32  -- BN affine params
    # patch_ref     : (9*Cp, NHW)  f32  -- VMEM scratch, reused by both convs
    Cp, NHW = x_ref.shape

    # Static lane shifts for the 9 taps, tap order k = (dh+1)*3 + (dw+1).
    shifts = [(-(dh * W + dw)) % NHW
              for dh in (-1, 0, 1) for dw in (-1, 0, 1)]

    def conv3x3(act, w_ref):
        # Build the (9*Cp, NHW) patch in-place: one XLU roll + one VPU
        # mask-multiply + one tile-aligned store per tap, then a single MXU
        # matmul with K = 9*Cp.
        for k, shift in enumerate(shifts):
            rolled = act if shift == 0 else pltpu.roll(act, shift, axis=1)
            if k == 4:  # center tap: mask is all-ones
                patch_ref[k * Cp:(k + 1) * Cp, :] = rolled
            else:
                patch_ref[k * Cp:(k + 1) * Cp, :] = rolled * m_ref[k:k + 1, :]
        return jnp.dot(w_ref[...], patch_ref[...],
                       preferred_element_type=jnp.float32)      # (Cp, NHW)

    def batchnorm(y, g_ref, b_ref):
        # training-mode BatchNorm2d: per-channel stats over the lane axis,
        # biased variance, eps=1e-5; yc computed once and reused.
        mean = jnp.mean(y, axis=1, keepdims=True)
        yc = y - mean
        var = jnp.mean(yc * yc, axis=1, keepdims=True)
        scale = lax.rsqrt(var + EPS) * g_ref[...]                # (Cp, 1)
        return yc * scale + b_ref[...]

    x = x_ref[...]
    # conv1 -> bn1 -> relu
    h1 = jnp.maximum(batchnorm(conv3x3(x, w1_ref), g1_ref, b1_ref), 0.0)
    # conv2 -> bn2 -> +x -> relu  (fused epilogue, single lane-dense store)
    h2 = batchnorm(conv3x3(h1, w2_ref), g2_ref, b2_ref)
    o_ref[...] = jnp.maximum(h2 + x, 0.0)


def residual_block(x_nchw, w1_oihw, w2_oihw, g1, b1, g2, b2):
    """Wrapper: NCHW/OIHW in, NCHW out (matches the PyTorch module, train-mode BN)."""
    N, C, H, W = x_nchw.shape
    Cp = ((C + 7) // 8) * 8        # pad channels to a full sublane tile
    NHW = N * H * W
    f32 = jnp.float32

    # Activations: NCHW -> (C, N*H*W) -> zero-pad channels to Cp.
    x2d = jnp.transpose(x_nchw, (1, 0, 2, 3)).reshape(C, NHW).astype(f32)
    x2d = jnp.pad(x2d, ((0, Cp - C), (0, 0)))

    # Precompute the 9 halo masks on the host (shared by both convs).
    p = jnp.arange(NHW, dtype=jnp.int32)
    w_idx = p % W
    h_idx = (p // W) % H
    mask_rows = []
    for k in range(9):
        dh, dw = k // 3 - 1, k % 3 - 1
        valid = ((h_idx + dh >= 0) & (h_idx + dh < H) &
                 (w_idx + dw >= 0) & (w_idx + dw < W))
        mask_rows.append(valid.astype(f32))
    masks = jnp.pad(jnp.stack(mask_rows, axis=0), ((0, 16 - 9), (0, 0)))

    def to_mat(w):
        # (Cout, Cin, 3, 3) -> zero-pad channels -> (Cp, 9*Cp); column index is
        # k*Cp + ci with tap k = kh*3 + kw, matching the patch row layout.
        w = jnp.pad(w.astype(f32), ((0, Cp - C), (0, Cp - C), (0, 0), (0, 0)))
        return jnp.transpose(w, (0, 2, 3, 1)).reshape(Cp, 9 * Cp)

    def pad_vec(v, fill):
        return jnp.pad(v.astype(f32), (0, Cp - C),
                       constant_values=fill).reshape(Cp, 1)

    w1m, w2m = to_mat(w1_oihw), to_mat(w2_oihw)
    g1p, b1p = pad_vec(g1, 1.0), pad_vec(b1, 0.0)
    g2p, b2p = pad_vec(g2, 1.0), pad_vec(b2, 0.0)

    # Size the scoped VMEM request from the real buffers, capped by the
    # device's physical VMEM (v7x has 64 MiB vs 128 MiB on v5e/v6e).
    act_bytes = Cp * NHW * 4
    patch_bytes = 9 * act_bytes
    w_bytes = 2 * Cp * 9 * Cp * 4
    mask_bytes = 16 * NHW * 4
    need = 3 * act_bytes + patch_bytes + w_bytes + mask_bytes + (4 << 20)
    try:
        phys_vmem = int(getattr(pltpu.get_tpu_info(), "vmem_capacity_bytes",
                                64 << 20))
    except Exception:
        phys_vmem = 64 << 20
    vmem_limit = int(min(phys_vmem - (8 << 20), max(16 << 20, need)))

    flops = 2 * (2 * Cp * 9 * Cp * NHW) + 20 * Cp * NHW

    vmem = pl.BlockSpec(memory_space=pltpu.MemorySpace.VMEM)
    out2d = pl.pallas_call(
        functools.partial(_residual_block_kernel, W=W),
        out_shape=jax.ShapeDtypeStruct((Cp, NHW), f32),
        in_specs=[vmem] * 8,
        out_specs=vmem,
        scratch_shapes=[pltpu.VMEM((9 * Cp, NHW), f32)],
        compiler_params=pltpu.CompilerParams(vmem_limit_bytes=vmem_limit),
        cost_estimate=pl.CostEstimate(
            flops=flops,
            transcendentals=2 * Cp,
            bytes_accessed=2 * act_bytes + w_bytes + mask_bytes),
    )(x2d, masks, w1m, w2m, g1p, b1p, g2p, b2p)

    # (Cp, NHW) -> NCHW, dropping the zero-padded channels.
    return jnp.transpose(out2d[:C].reshape(C, N, H, W), (1, 0, 2, 3))


def ref_residual_block(x, w1, w2, g1, b1, g2, b2):
    """Pure-JAX reference (NCHW) mirroring the PyTorch module in train mode."""
    def conv(y, w):
        return lax.conv_general_dilated(
            y, w, window_strides=(1, 1), padding=((1, 1), (1, 1)),
            dimension_numbers=('NCHW', 'OIHW', 'NCHW'))

    def bn(y, g, b):
        mean = jnp.mean(y, axis=(0, 2, 3), keepdims=True)
        var = jnp.mean((y - mean) ** 2, axis=(0, 2, 3), keepdims=True)
        return ((y - mean) / jnp.sqrt(var + EPS)) * g.reshape(1, -1, 1, 1) \
            + b.reshape(1, -1, 1, 1)

    out = jax.nn.relu(bn(conv(x, w1), g1, b1))
    out = bn(conv(out, w2), g2, b2)
    return jax.nn.relu(out + x)


if __name__ == "__main__":
    N, C, H, W = 2, 4, 16, 16
    key = jax.random.PRNGKey(0)
    kx, kw1, kw2 = jax.random.split(key, 3)

    x = jax.random.normal(kx, (N, C, H, W), jnp.float32)

    # Deterministic "PyTorch-like" conv init: uniform(-1/sqrt(fan_in), 1/sqrt(fan_in))
    bound = 1.0 / math.sqrt(C * 3 * 3)
    w1 = jax.random.uniform(kw1, (C, C, 3, 3), jnp.float32, -bound, bound)
    w2 = jax.random.uniform(kw2, (C, C, 3, 3), jnp.float32, -bound, bound)

    # BatchNorm2d default init: gamma=1, beta=0
    g1 = jnp.ones((C,), jnp.float32)
    b1 = jnp.zeros((C,), jnp.float32)
    g2 = jnp.ones((C,), jnp.float32)
    b2 = jnp.zeros((C,), jnp.float32)

    out = jax.block_until_ready(residual_block(x, w1, w2, g1, b1, g2, b2))
    ref = ref_residual_block(x, w1, w2, g1, b1, g2, b2)

    assert out.shape == (N, C, H, W)
    max_err = float(jnp.max(jnp.abs(out - ref)))
    assert jnp.allclose(out, ref, atol=1e-4, rtol=1e-4), f"max_err={max_err}"

    print("KERNEL_OK")
</pallas_src>

<mosaic_0001>
module attributes {stable_mosaic.version = 11 : i64} {
  func.func @_residual_block_kernel(%arg0: memref<8x512xf32, #tpu.memory_space<vmem>>, %arg1: memref<16x512xf32, #tpu.memory_space<vmem>>, %arg2: memref<8x72xf32, #tpu.memory_space<vmem>>, %arg3: memref<8x72xf32, #tpu.memory_space<vmem>>, %arg4: memref<8x1xf32, #tpu.memory_space<vmem>>, %arg5: memref<8x1xf32, #tpu.memory_space<vmem>>, %arg6: memref<8x1xf32, #tpu.memory_space<vmem>>, %arg7: memref<8x1xf32, #tpu.memory_space<vmem>>, %arg8: memref<8x512xf32, #tpu.memory_space<vmem>>, %arg9: memref<72x512xf32, #tpu.memory_space<vmem>>) attributes {dimension_semantics = [], scalar_prefetch = 0 : i64, scratch_operands = 1 : i64, tpu.core_type = #tpu.core_type<tc>} {
    %c0 = arith.constant 0 : index
    %c0_0 = arith.constant 0 : index
    %0 = vector.load %arg0[%c0, %c0_0] : memref<8x512xf32, #tpu.memory_space<vmem>>, vector<8x512xf32>
    %c17_i32 = arith.constant 17 : i32
    %1 = tpu.dynamic_rotate %0 by %c17_i32 dim 1 : vector<8x512xf32>, i32 -> vector<8x512xf32>
    %c0_1 = arith.constant 0 : index
    %c0_2 = arith.constant 0 : index
    %2 = vector.load %arg1[%c0_1, %c0_2] : memref<16x512xf32, #tpu.memory_space<vmem>>, vector<1x512xf32>
    %3 = vector.broadcast %2 : vector<1x512xf32> to vector<8x512xf32>
    %4 = arith.mulf %1, %3 : vector<8x512xf32>
    %c0_3 = arith.constant 0 : index
    %c0_4 = arith.constant 0 : index
    %5 = vector.load %arg9[%c0_3, %c0_4] : memref<72x512xf32, #tpu.memory_space<vmem>>, vector<8x512xf32>
    tpu.vector_store %arg9[%c0_3, %c0_4], %4 {strides = array<i32>} : memref<72x512xf32, #tpu.memory_space<vmem>>, vector<8x512xf32>,
    %c16_i32 = arith.constant 16 : i32
    %6 = tpu.dynamic_rotate %0 by %c16_i32 dim 1 : vector<8x512xf32>, i32 -> vector<8x512xf32>
    %c1 = arith.constant 1 : index
    %c0_5 = arith.constant 0 : index
    %7 = vector.load %arg1[%c1, %c0_5] : memref<16x512xf32, #tpu.memory_space<vmem>>, vector<1x512xf32>
    %8 = vector.broadcast %7 : vector<1x512xf32> to vector<8x512xf32>
    %9 = arith.mulf %6, %8 : vector<8x512xf32>
    %c8 = arith.constant 8 : index
    %c0_6 = arith.constant 0 : index
    %10 = vector.load %arg9[%c8, %c0_6] : memref<72x512xf32, #tpu.memory_space<vmem>>, vector<8x512xf32>
    tpu.vector_store %arg9[%c8, %c0_6], %9 {strides = array<i32>} : memref<72x512xf32, #tpu.memory_space<vmem>>, vector<8x512xf32>,
    %c15_i32 = arith.constant 15 : i32
    %11 = tpu.dynamic_rotate %0 by %c15_i32 dim 1 : vector<8x512xf32>, i32 -> vector<8x512xf32>
    %c2 = arith.constant 2 : index
    %c0_7 = arith.constant 0 : index
    %12 = vector.load %arg1[%c2, %c0_7] : memref<16x512xf32, #tpu.memory_space<vmem>>, vector<1x512xf32>
    %13 = vector.broadcast %12 : vector<1x512xf32> to vector<8x512xf32>
    %14 = arith.mulf %11, %13 : vector<8x512xf32>
    %c16 = arith.constant 16 : index
    %c0_8 = arith.constant 0 : index
    %15 = vector.load %arg9[%c16, %c0_8] : memref<72x512xf32, #tpu.memory_space<vmem>>, vector<8x512xf32>
    tpu.vector_store %arg9[%c16, %c0_8], %14 {strides = array<i32>} : memref<72x512xf32, #tpu.memory_space<vmem>>, vector<8x512xf32>,
    %c1_i32 = arith.constant 1 : i32
    %16 = tpu.dynamic_rotate %0 by %c1_i32 dim 1 : vector<8x512xf32>, i32 -> vector<8x512xf32>
    %c3 = arith.constant 3 : index
    %c0_9 = arith.constant 0 : index
    %17 = vector.load %arg1[%c3, %c0_9] : memref<16x512xf32, #tpu.memory_space<vmem>>, vector<1x512xf32>
    %18 = vector.broadcast %17 : vector<1x512xf32> to vector<8x512xf32>
    %19 = arith.mulf %16, %18 : vector<8x512xf32>
    %c24 = arith.constant 24 : index
    %c0_10 = arith.constant 0 : index
    %20 = vector.load %arg9[%c24, %c0_10] : memref<72x512xf32, #tpu.memory_space<vmem>>, vector<8x512xf32>
    tpu.vector_store %arg9[%c24, %c0_10], %19 {strides = array<i32>} : memref<72x512xf32, #tpu.memory_space<vmem>>, vector<8x512xf32>,
    %c32 = arith.constant 32 : index
    %c0_11 = arith.constant 0 : index
    %21 = vector.load %arg9[%c32, %c0_11] : memref<72x512xf32, #tpu.memory_space<vmem>>, vector<8x512xf32>
    tpu.vector_store %arg9[%c32, %c0_11], %0 {strides = array<i32>} : memref<72x512xf32, #tpu.memory_space<vmem>>, vector<8x512xf32>,
    %c511_i32 = arith.constant 511 : i32
    %22 = tpu.dynamic_rotate %0 by %c511_i32 dim 1 : vector<8x512xf32>, i32 -> vector<8x512xf32>
    %c5 = arith.constant 5 : index
    %c0_12 = arith.constant 0 : index
    %23 = vector.load %arg1[%c5, %c0_12] : memref<16x512xf32, #tpu.memory_space<vmem>>, vector<1x512xf32>
    %24 = vector.broadcast %23 : vector<1x512xf32> to vector<8x512xf32>
    %25 = arith.mulf %22, %24 : vector<8x512xf32>
    %c40 = arith.constant 40 : index
    %c0_13 = arith.constant 0 : index
    %26 = vector.load %arg9[%c40, %c0_13] : memref<72x512xf32, #tpu.memory_space<vmem>>, vector<8x512xf32>
    tpu.vector_store %arg9[%c40, %c0_13], %25 {strides = array<i32>} : memref<72x512xf32, #tpu.memory_space<vmem>>, vector<8x512xf32>,
    %c497_i32 = arith.constant 497 : i32
    %27 = tpu.dynamic_rotate %0 by %c497_i32 dim 1 : vector<8x512xf32>, i32 -> vector<8x512xf32>
    %c6 = arith.constant 6 : index
    %c0_14 = arith.constant 0 : index
    %28 = vector.load %arg1[%c6, %c0_14] : memref<16x512xf32, #tpu.memory_space<vmem>>, vector<1x512xf32>
    %29 = vector.broadcast %28 : vector<1x512xf32> to vector<8x512xf32>
    %30 = arith.mulf %27, %29 : vector<8x512xf32>
    %c48 = arith.constant 48 : index
    %c0_15 = arith.constant 0 : index
    %31 = vector.load %arg9[%c48, %c0_15] : memref<72x512xf32, #tpu.memory_space<vmem>>, vector<8x512xf32>
    tpu.vector_store %arg9[%c48, %c0_15], %30 {strides = array<i32>} : memref<72x512xf32, #tpu.memory_space<vmem>>, vector<8x512xf32>,
    %c496_i32 = arith.constant 496 : i32
    %32 = tpu.dynamic_rotate %0 by %c496_i32 dim 1 : vector<8x512xf32>, i32 -> vector<8x512xf32>
    %c7 = arith.constant 7 : index
    %c0_16 = arith.constant 0 : index
    %33 = vector.load %arg1[%c7, %c0_16] : memref<16x512xf32, #tpu.memory_space<vmem>>, vector<1x512xf32>
    %34 = vector.broadcast %33 : vector<1x512xf32> to vector<8x512xf32>
    %35 = arith.mulf %32, %34 : vector<8x512xf32>
    %c56 = arith.constant 56 : index
    %c0_17 = arith.constant 0 : index
    %36 = vector.load %arg9[%c56, %c0_17] : memref<72x512xf32, #tpu.memory_space<vmem>>, vector<8x512xf32>
    tpu.vector_store %arg9[%c56, %c0_17], %35 {strides = array<i32>} : memref<72x512xf32, #tpu.memory_space<vmem>>, vector<8x512xf32>,
    %c495_i32 = arith.constant 495 : i32
    %37 = tpu.dynamic_rotate %0 by %c495_i32 dim 1 : vector<8x512xf32>, i32 -> vector<8x512xf32>
    %c8_18 = arith.constant 8 : index
    %c0_19 = arith.constant 0 : index
    %38 = vector.load %arg1[%c8_18, %c0_19] : memref<16x512xf32, #tpu.memory_space<vmem>>, vector<1x512xf32>
    %39 = vector.broadcast %38 : vector<1x512xf32> to vector<8x512xf32>
    %40 = arith.mulf %37, %39 : vector<8x512xf32>
    %c64 = arith.constant 64 : index
    %c0_20 = arith.constant 0 : index
    %41 = vector.load %arg9[%c64, %c0_20] : memref<72x512xf32, #tpu.memory_space<vmem>>, vector<8x512xf32>
    tpu.vector_store %arg9[%c64, %c0_20], %40 {strides = array<i32>} : memref<72x512xf32, #tpu.memory_space<vmem>>, vector<8x512xf32>,
    %c0_21 = arith.constant 0 : index
    %c0_22 = arith.constant 0 : index
    %42 = vector.load %arg2[%c0_21, %c0_22] : memref<8x72xf32, #tpu.memory_space<vmem>>, vector<8x72xf32>
    %c0_23 = arith.constant 0 : index
    %c0_24 = arith.constant 0 : index
    %43 = vector.load %arg9[%c0_23, %c0_24] : memref<72x512xf32, #tpu.memory_space<vmem>>, vector<72x512xf32>
    %cst = arith.constant dense<0.000000e+00> : vector<8x512xf32>
    %44 = tpu.matmul %42, %43, %cst {dimension_numbers = #tpu.dot_dimension_numbers<[1], [0], [0], [1], [0, 0, 1, 1], [], []>} : vector<8x72xf32>, vector<72x512xf32>, vector<8x512xf32> -> vector<8x512xf32>
    %cst_25 = arith.constant dense<0.000000e+00> : vector<8xf32>
    %45 = vector.multi_reduction <add>, %44, %cst_25 [1] : vector<8x512xf32> to vector<8xf32>
    %46 = vector.shape_cast %45 : vector<8xf32> to vector<8x1xf32>
    %cst_26 = arith.constant 5.120000e+02 : f32
    %47 = vector.broadcast %cst_26 : f32 to vector<8x1xf32>
    %48 = arith.divf %46, %47 : vector<8x1xf32>
    %49 = vector.broadcast %48 : vector<8x1xf32> to vector<8x512xf32>
    %50 = arith.subf %44, %49 : vector<8x512xf32>
    %51 = arith.mulf %50, %50 : vector<8x512xf32>
    %cst_27 = arith.constant dense<0.000000e+00> : vector<8xf32>
    %52 = vector.multi_reduction <add>, %51, %cst_27 [1] : vector<8x512xf32> to vector<8xf32>
    %53 = vector.shape_cast %52 : vector<8xf32> to vector<8x1xf32>
    %cst_28 = arith.constant 5.120000e+02 : f32
    %54 = vector.broadcast %cst_28 : f32 to vector<8x1xf32>
    %55 = arith.divf %53, %54 : vector<8x1xf32>
    %cst_29 = arith.constant 9.99999974E-6 : f32
    %56 = vector.broadcast %cst_29 : f32 to vector<8x1xf32>
    %57 = arith.addf %55, %56 : vector<8x1xf32>
    %58 = math.rsqrt %57 : vector<8x1xf32>
    %c0_30 = arith.constant 0 : index
    %c0_31 = arith.constant 0 : index
    %59 = vector.load %arg4[%c0_30, %c0_31] : memref<8x1xf32, #tpu.memory_space<vmem>>, vector<8x1xf32>
    %60 = arith.mulf %58, %59 : vector<8x1xf32>
    %61 = vector.broadcast %60 : vector<8x1xf32> to vector<8x512xf32>
    %62 = arith.mulf %50, %61 : vector<8x512xf32>
    %c0_32 = arith.constant 0 : index
    %c0_33 = arith.constant 0 : index
    %63 = vector.load %arg5[%c0_32, %c0_33] : memref<8x1xf32, #tpu.memory_space<vmem>>, vector<8x1xf32>
    %64 = vector.broadcast %63 : vector<8x1xf32> to vector<8x512xf32>
    %65 = arith.addf %62, %64 : vector<8x512xf32>
    %cst_34 = arith.constant 0.000000e+00 : f32
    %66 = vector.broadcast %cst_34 : f32 to vector<8x512xf32>
    %67 = arith.maximumf %65, %66 : vector<8x512xf32>
    %c17_i32_35 = arith.constant 17 : i32
    %68 = tpu.dynamic_rotate %67 by %c17_i32_35 dim 1 : vector<8x512xf32>, i32 -> vector<8x512xf32>
    %c0_36 = arith.constant 0 : index
    %c0_37 = arith.constant 0 : index
    %69 = vector.load %arg1[%c0_36, %c0_37] : memref<16x512xf32, #tpu.memory_space<vmem>>, vector<1x512xf32>
    %70 = vector.broadcast %69 : vector<1x512xf32> to vector<8x512xf32>
    %71 = arith.mulf %68, %70 : vector<8x512xf32>
    %c0_38 = arith.constant 0 : index
    %c0_39 = arith.constant 0 : index
    %72 = vector.load %arg9[%c0_38, %c0_39] : memref<72x512xf32, #tpu.memory_space<vmem>>, vector<8x512xf32>
    tpu.vector_store %arg9[%c0_38, %c0_39], %71 {strides = array<i32>} : memref<72x512xf32, #tpu.memory_space<vmem>>, vector<8x512xf32>,
    %c16_i32_40 = arith.constant 16 : i32
    %73 = tpu.dynamic_rotate %67 by %c16_i32_40 dim 1 : vector<8x512xf32>, i32 -> vector<8x512xf32>
    %c1_41 = arith.constant 1 : index
    %c0_42 = arith.constant 0 : index
    %74 = vector.load %arg1[%c1_41, %c0_42] : memref<16x512xf32, #tpu.memory_space<vmem>>, vector<1x512xf32>
    %75 = vector.broadcast %74 : vector<1x512xf32> to vector<8x512xf32>
    %76 = arith.mulf %73, %75 : vector<8x512xf32>
    %c8_43 = arith.constant 8 : index
    %c0_44 = arith.constant 0 : index
    %77 = vector.load %arg9[%c8_43, %c0_44] : memref<72x512xf32, #tpu.memory_space<vmem>>, vector<8x512xf32>
    tpu.vector_store %arg9[%c8_43, %c0_44], %76 {strides = array<i32>} : memref<72x512xf32, #tpu.memory_space<vmem>>, vector<8x512xf32>,
    %c15_i32_45 = arith.constant 15 : i32
    %78 = tpu.dynamic_rotate %67 by %c15_i32_45 dim 1 : vector<8x512xf32>, i32 -> vector<8x512xf32>
    %c2_46 = arith.constant 2 : index
    %c0_47 = arith.constant 0 : index
    %79 = vector.load %arg1[%c2_46, %c0_47] : memref<16x512xf32, #tpu.memory_space<vmem>>, vector<1x512xf32>
    %80 = vector.broadcast %79 : vector<1x512xf32> to vector<8x512xf32>
    %81 = arith.mulf %78, %80 : vector<8x512xf32>
    %c16_48 = arith.constant 16 : index
    %c0_49 = arith.constant 0 : index
    %82 = vector.load %arg9[%c16_48, %c0_49] : memref<72x512xf32, #tpu.memory_space<vmem>>, vector<8x512xf32>
    tpu.vector_store %arg9[%c16_48, %c0_49], %81 {strides = array<i32>} : memref<72x512xf32, #tpu.memory_space<vmem>>, vector<8x512xf32>,
    %c1_i32_50 = arith.constant 1 : i32
    %83 = tpu.dynamic_rotate %67 by %c1_i32_50 dim 1 : vector<8x512xf32>, i32 -> vector<8x512xf32>
    %c3_51 = arith.constant 3 : index
    %c0_52 = arith.constant 0 : index
    %84 = vector.load %arg1[%c3_51, %c0_52] : memref<16x512xf32, #tpu.memory_space<vmem>>, vector<1x512xf32>
    %85 = vector.broadcast %84 : vector<1x512xf32> to vector<8x512xf32>
    %86 = arith.mulf %83, %85 : vector<8x512xf32>
    %c24_53 = arith.constant 24 : index
    %c0_54 = arith.constant 0 : index
    %87 = vector.load %arg9[%c24_53, %c0_54] : memref<72x512xf32, #tpu.memory_space<vmem>>, vector<8x512xf32>
    tpu.vector_store %arg9[%c24_53, %c0_54], %86 {strides = array<i32>} : memref<72x512xf32, #tpu.memory_space<vmem>>, vector<8x512xf32>,
    %c32_55 = arith.constant 32 : index
    %c0_56 = arith.constant 0 : index
    %88 = vector.load %arg9[%c32_55, %c0_56] : memref<72x512xf32, #tpu.memory_space<vmem>>, vector<8x512xf32>
    tpu.vector_store %arg9[%c32_55, %c0_56], %67 {strides = array<i32>} : memref<72x512xf32, #tpu.memory_space<vmem>>, vector<8x512xf32>,
    %c511_i32_57 = arith.constant 511 : i32
    %89 = tpu.dynamic_rotate %67 by %c511_i32_57 dim 1 : vector<8x512xf32>, i32 -> vector<8x512xf32>
    %c5_58 = arith.constant 5 : index
    %c0_59 = arith.constant 0 : index
    %90 = vector.load %arg1[%c5_58, %c0_59] : memref<16x512xf32, #tpu.memory_space<vmem>>, vector<1x512xf32>
    %91 = vector.broadcast %90 : vector<1x512xf32> to vector<8x512xf32>
    %92 = arith.mulf %89, %91 : vector<8x512xf32>
    %c40_60 = arith.constant 40 : index
    %c0_61 = arith.constant 0 : index
    %93 = vector.load %arg9[%c40_60, %c0_61] : memref<72x512xf32, #tpu.memory_space<vmem>>, vector<8x512xf32>
    tpu.vector_store %arg9[%c40_60, %c0_61], %92 {strides = array<i32>} : memref<72x512xf32, #tpu.memory_space<vmem>>, vector<8x512xf32>,
    %c497_i32_62 = arith.constant 497 : i32
    %94 = tpu.dynamic_rotate %67 by %c497_i32_62 dim 1 : vector<8x512xf32>, i32 -> vector<8x512xf32>
    %c6_63 = arith.constant 6 : index
    %c0_64 = arith.constant 0 : index
    %95 = vector.load %arg1[%c6_63, %c0_64] : memref<16x512xf32, #tpu.memory_space<vmem>>, vector<1x512xf32>
    %96 = vector.broadcast %95 : vector<1x512xf32> to vector<8x512xf32>
    %97 = arith.mulf %94, %96 : vector<8x512xf32>
    %c48_65 = arith.constant 48 : index
    %c0_66 = arith.constant 0 : index
    %98 = vector.load %arg9[%c48_65, %c0_66] : memref<72x512xf32, #tpu.memory_space<vmem>>, vector<8x512xf32>
    tpu.vector_store %arg9[%c48_65, %c0_66], %97 {strides = array<i32>} : memref<72x512xf32, #tpu.memory_space<vmem>>, vector<8x512xf32>,
    %c496_i32_67 = arith.constant 496 : i32
    %99 = tpu.dynamic_rotate %67 by %c496_i32_67 dim 1 : vector<8x512xf32>, i32 -> vector<8x512xf32>
    %c7_68 = arith.constant 7 : index
    %c0_69 = arith.constant 0 : index
    %100 = vector.load %arg1[%c7_68, %c0_69] : memref<16x512xf32, #tpu.memory_space<vmem>>, vector<1x512xf32>
    %101 = vector.broadcast %100 : vector<1x512xf32> to vector<8x512xf32>
    %102 = arith.mulf %99, %101 : vector<8x512xf32>
    %c56_70 = arith.constant 56 : index
    %c0_71 = arith.constant 0 : index
    %103 = vector.load %arg9[%c56_70, %c0_71] : memref<72x512xf32, #tpu.memory_space<vmem>>, vector<8x512xf32>
    tpu.vector_store %arg9[%c56_70, %c0_71], %102 {strides = array<i32>} : memref<72x512xf32, #tpu.memory_space<vmem>>, vector<8x512xf32>,
    %c495_i32_72 = arith.constant 495 : i32
    %104 = tpu.dynamic_rotate %67 by %c495_i32_72 dim 1 : vector<8x512xf32>, i32 -> vector<8x512xf32>
    %c8_73 = arith.constant 8 : index
    %c0_74 = arith.constant 0 : index
    %105 = vector.load %arg1[%c8_73, %c0_74] : memref<16x512xf32, #tpu.memory_space<vmem>>, vector<1x512xf32>
    %106 = vector.broadcast %105 : vector<1x512xf32> to vector<8x512xf32>
    %107 = arith.mulf %104, %106 : vector<8x512xf32>
    %c64_75 = arith.constant 64 : index
    %c0_76 = arith.constant 0 : index
    %108 = vector.load %arg9[%c64_75, %c0_76] : memref<72x512xf32, #tpu.memory_space<vmem>>, vector<8x512xf32>
    tpu.vector_store %arg9[%c64_75, %c0_76], %107 {strides = array<i32>} : memref<72x512xf32, #tpu.memory_space<vmem>>, vector<8x512xf32>,
    %c0_77 = arith.constant 0 : index
    %c0_78 = arith.constant 0 : index
    %109 = vector.load %arg3[%c0_77, %c0_78] : memref<8x72xf32, #tpu.memory_space<vmem>>, vector<8x72xf32>
    %c0_79 = arith.constant 0 : index
    %c0_80 = arith.constant 0 : index
    %110 = vector.load %arg9[%c0_79, %c0_80] : memref<72x512xf32, #tpu.memory_space<vmem>>, vector<72x512xf32>
    %cst_81 = arith.constant dense<0.000000e+00> : vector<8x512xf32>
    %111 = tpu.matmul %109, %110, %cst_81 {dimension_numbers = #tpu.dot_dimension_numbers<[1], [0], [0], [1], [0, 0, 1, 1], [], []>} : vector<8x72xf32>, vector<72x512xf32>, vector<8x512xf32> -> vector<8x512xf32>
    %cst_82 = arith.constant dense<0.000000e+00> : vector<8xf32>
    %112 = vector.multi_reduction <add>, %111, %cst_82 [1] : vector<8x512xf32> to vector<8xf32>
    %113 = vector.shape_cast %112 : vector<8xf32> to vector<8x1xf32>
    %cst_83 = arith.constant 5.120000e+02 : f32
    %114 = vector.broadcast %cst_83 : f32 to vector<8x1xf32>
    %115 = arith.divf %113, %114 : vector<8x1xf32>
    %116 = vector.broadcast %115 : vector<8x1xf32> to vector<8x512xf32>
    %117 = arith.subf %111, %116 : vector<8x512xf32>
    %118 = arith.mulf %117, %117 : vector<8x512xf32>
    %cst_84 = arith.constant dense<0.000000e+00> : vector<8xf32>
    %119 = vector.multi_reduction <add>, %118, %cst_84 [1] : vector<8x512xf32> to vector<8xf32>
    %120 = vector.shape_cast %119 : vector<8xf32> to vector<8x1xf32>
    %cst_85 = arith.constant 5.120000e+02 : f32
    %121 = vector.broadcast %cst_85 : f32 to vector<8x1xf32>
    %122 = arith.divf %120, %121 : vector<8x1xf32>
    %cst_86 = arith.constant 9.99999974E-6 : f32
    %123 = vector.broadcast %cst_86 : f32 to vector<8x1xf32>
    %124 = arith.addf %122, %123 : vector<8x1xf32>
    %125 = math.rsqrt %124 : vector<8x1xf32>
    %c0_87 = arith.constant 0 : index
    %c0_88 = arith.constant 0 : index
    %126 = vector.load %arg6[%c0_87, %c0_88] : memref<8x1xf32, #tpu.memory_space<vmem>>, vector<8x1xf32>
    %127 = arith.mulf %125, %126 : vector<8x1xf32>
    %128 = vector.broadcast %127 : vector<8x1xf32> to vector<8x512xf32>
    %129 = arith.mulf %117, %128 : vector<8x512xf32>
    %c0_89 = arith.constant 0 : index
    %c0_90 = arith.constant 0 : index
    %130 = vector.load %arg7[%c0_89, %c0_90] : memref<8x1xf32, #tpu.memory_space<vmem>>, vector<8x1xf32>
    %131 = vector.broadcast %130 : vector<8x1xf32> to vector<8x512xf32>
    %132 = arith.addf %129, %131 : vector<8x512xf32>
    %133 = arith.addf %132, %0 : vector<8x512xf32>
    %cst_91 = arith.constant 0.000000e+00 : f32
    %134 = vector.broadcast %cst_91 : f32 to vector<8x512xf32>
    %135 = arith.maximumf %133, %134 : vector<8x512xf32>
    %c0_92 = arith.constant 0 : index
    %c0_93 = arith.constant 0 : index
    %136 = vector.load %arg8[%c0_92, %c0_93] : memref<8x512xf32, #tpu.memory_space<vmem>>, vector<8x512xf32>
    tpu.vector_store %arg8[%c0_92, %c0_93], %135 {strides = array<i32>} : memref<8x512xf32, #tpu.memory_space<vmem>>, vector<8x512xf32>,
    return
  }
}

</mosaic_0001>

<bundles_post_ra>
// kernel: tpu_custom_call.1
= control target key start
LH: loop header
LB: loop body
LE: loop exit
PB: predicated region body
PF: predicated region fallthrough
CT: control target
= control target key end

     0   :  { %13 = vsyncpa [#allocation4], 0  ;;  %s1915_s0 = inlined_call_operand.vmem [shape: f32[8,512], index: 0, kind: input, shape index: {}]   ;;  %s1916_s1 = inlined_call_operand.hbm [shape: f32[16,512], index: 1, kind: input, shape index: {}]   ;;  %s1917_s2 = inlined_call_operand.vmem [shape: f32[8,72], index: 2, kind: input, shape index: {}]   ;;  %s1918_s3 = inlined_call_operand.hbm [shape: f32[8,72], index: 3, kind: input, shape index: {}]   ;;  %s1919_s4 = inlined_call_operand.vmem [shape: f32[8,1], index: 4, kind: input, shape index: {}]   ;;  %s1920_s5 = inlined_call_operand.vmem [shape: f32[8,1], index: 5, kind: input, shape index: {}]   ;;  %s1921_s6 = inlined_call_operand.vmem [shape: f32[8,1], index: 6, kind: input, shape index: {}]   ;;  %s1922_s7 = inlined_call_operand.vmem [shape: f32[8,1], index: 7, kind: input, shape index: {}]   ;;  %s1923_s8 = inlined_call_operand.hbm [shape: f32[8,512], index: 8, kind: output, shape index: {}]  }
   0x1   :  { %14 = vsyncpa [#allocation7], 0 }
   0x2   :  { %15 = vsyncpa [#allocation5], 0  ;;  %s1406_s27 = smov [#allocation3]   ;;  %s1334_s9 = scalar_lea.hbm %s1916_s1, 1024 }
   0x3   :  { %s23_s28 = sshll.u32 %s1406_s27, 4  ;;  %p1335_p0 = scmp.ne.s32.totalorder %s1916_s1, %s1334_s9  ;;  %s24_s28 = int_to_ptr.vmem [resolvable:$true] %s23_s28 }
   0x4   :  { %p1338_p1 = scmp.lt.u32.totalorder %s1334_s9, %s1916_s1 }
   0x6   :  { %p1340_p2 = pnand %p1338_p1, %p1335_p0 }
   0x8   :  { %1343 = shalt.err (!%p1340_p2)
}
   0x9   :  { %s1344_s14 = scalar_lea.vmem %s24_s28, 1024  ;;  %p1349_p4 = scmp.lt.s32.totalorder %s24_s28, %s24_s28 }
   0xa   :  { %p1345_p3 = scmp.ne.s32.totalorder %s24_s28, %s1344_s14  ;;  %p1350_p5 = scmp.lt.s32.totalorder %s1344_s14, %s1344_s14 }
   0xc   :  { %p1351_p6 = por %p1350_p5, %p1349_p4 }
   0xe   :  { %p1352_p7 = pnand %p1351_p6, %p1345_p3 }
  0x10   :  { %1355 = shalt.err (!%p1352_p7)
}
  0x11   :  { %s1407_s15 = smov 512   ;;  %s1408_s16 = smov 32  }
  0x12   :  { %29 = dma.hbm_to_vmem [thread:$0]  %s1916_s1, 1024, %s24_s28, [#allocation4], %s1407_s15, %s1407_s15, %s1408_s16  }
  0x13   :  { %s1409_s19 = smov [#allocation6]   ;;  %s1356_s23 = scalar_lea.hbm %s1918_s3, 128 }
  0x14   :  { %s38_s20 = sshll.u32 %s1409_s19, 4  ;;  %p1357_p8 = scmp.ne.s32.totalorder %s1918_s3, %s1356_s23  ;;  %s39_s20 = int_to_ptr.vmem [resolvable:$true] %s38_s20 }
  0x15   :  { %p1360_p9 = scmp.lt.u32.totalorder %s1356_s23, %s1918_s3 }
  0x17   :  { %p1362_p10 = pnand %p1360_p9, %p1357_p8 }
  0x19   :  { %1365 = shalt.err (!%p1362_p10)
}
  0x1a   :  { %s1366_s29 = scalar_lea.vmem %s39_s20, 128  ;;  %p1371_p12 = scmp.lt.s32.totalorder %s39_s20, %s39_s20 }
  0x1b   :  { %p1367_p11 = scmp.ne.s32.totalorder %s39_s20, %s1366_s29  ;;  %p1372_p13 = scmp.lt.s32.totalorder %s1366_s29, %s1366_s29 }
  0x1d   :  { %p1373_p0 = por %p1372_p13, %p1371_p12 }
  0x1f   :  { %p1374_p1 = pnand %p1373_p0, %p1367_p11 }
  0x21   :  { %1377 = shalt.err (!%p1374_p1)
}
  0x22   :  { %41 = dma.hbm_to_vmem [thread:$0]  %s1918_s3, 128, %s39_s20, [#allocation7]  }
  0x23   :  { %1400 = dma.done.wait [#allocation4], 1024  }
  0x24   :  { %1401 = vsyncadd [#allocation4], 4294966272 }
  0x25   :  { %1402 = dma.done.wait [#allocation7], 128  }
  0x26   :  { %1403 = vsyncadd [#allocation7], 4294967168  ;;  %v1493_v0 = vld [vmem:[%s1915_s0] sm:$0xff]  ;;  %s1410_s10 = smov 16   ;;  %s1411_s11 = smov 17   ;;  %v1502_v1 = vld [vmem:[%s1915_s0 + $0x8] sm:$0xff]  ;;  %v68_v5 = vlaneseq }
  0x27   :  { %105 = vrot.lane.b32.xlu1 %v1493_v0, %s1410_s10  ;;  %60 = vrot.lane.b32.xlu0 %v1493_v0, %s1411_s11  ;;  %v1511_v2 = vld [vmem:[%s1915_s0 + $0x18] sm:$0xff]  ;;  %v1520_v3 = vld [vmem:[%s1915_s0 + $0x10] sm:$0xff]  ;;  %s1412_s17 = smov 15   ;;  %s1413_s18 = smov 1   ;;  %v1417_v4 = vmov 0.0   ;;  %vm454_vm8 = vcmask 588800  }
  0x28   :  { %s1414_s19 = smov 127   ;;  %s1415_s20 = smov 113   ;;  %522 = vmatprep.mubr.f32.mxu0 %v1417_v4  ;;  %593 = vmatprep.mubr.f32.mxu1 %v1417_v4  ;;  %v78_v6 = vshrl.u32 %v68_v5, 7  ;;  %v1576_v7 = vand.u32 127, %v68_v5 }
  0x29   :  { %s1416_s21 = smov 112   ;;  %s1418_s22 = smov 111   ;;  %v119_v9 = vld [vmem:[#allocation3 + $0x1] ss:$8 sm:$0xf] }
  0x2a   :  { %v1578_v8 = vsub.s32 1, %v78_v6  ;;  %v75_v10 = vld [vmem:[#allocation3] ss:$8 sm:$0xf]  ;;  %v1580_v13 = vsub.s32 0, %v78_v6  ;;  %vm113_vm0 = vcmp.lt.s32.totalorder %v1576_v7, 16 }
  0x2b   :  { %107 = vrot.lane.b32.xlu1 %v1502_v1, %s1410_s10  ;;  %62 = vrot.lane.b32.xlu0 %v1502_v1, %s1411_s11  ;;  %vm70_vm1 = vcmp.lt.s32.totalorder %v1576_v7, 17  ;;  %v1586_v18 = vsub.s32 2, %v78_v6  ;;  %v1588_v19 = vsub.s32 3, %v78_v6  ;;  %v163_v48 = vld [vmem:[#allocation3 + $0x2] ss:$8 sm:$0xf] }
  0x2c   :  { %v84_v14 = vrot.slane %v75_v10, %v1578_v8  ;;  %v128_v15 = vrot.slane %v119_v9, %v1578_v8  ;;  %v124_v22 = vrot.slane %v119_v9, %v1580_v13  ;;  %v80_v23 = vrot.slane %v75_v10, %v1580_v13  ;;  %v207_v49 = vld [vmem:[#allocation3 + $0x3] ss:$8 sm:$0xf] }
  0x2d   :  { %v132_v31 = vrot.slane %v119_v9, %v1586_v18  ;;  %v136_v32 = vrot.slane %v119_v9, %v1588_v19  ;;  %v88_v35 = vrot.slane %v75_v10, %v1586_v18  ;;  %v92_v36 = vrot.slane %v75_v10, %v1588_v19 }
  0x2e   :  { %vm157_vm2 = vcmp.lt.s32.totalorder %v1576_v7, 15  ;;  %v172_v54 = vrot.slane %v163_v48, %v1578_v8  ;;  %vm201_vm3 = vcmp.lt.s32.totalorder %v1576_v7, 1  ;;  %v216_v55 = vrot.slane %v207_v49, %v1578_v8 }
  0x2f   :  { %111 = vrot.lane.b32.xlu1 %v1511_v2, %s1410_s10  ;;  %66 = vrot.lane.b32.xlu0 %v1511_v2, %s1411_s11  ;;  %v212_v62 = vrot.slane %v207_v49, %v1580_v13  ;;  %v168_v63 = vrot.slane %v163_v48, %v1580_v13  ;;  %vm249_vm4 = vcmp.lt.s32.totalorder %v1576_v7, 127  ;;  %vm293_vm5 = vcmp.lt.s32.totalorder %v1576_v7, 113 }
  0x30   :  { %vm337_vm6 = vcmp.lt.s32.totalorder %v1576_v7, 112  ;;  %vm381_vm7 = vcmp.lt.s32.totalorder %v1576_v7, 111 }
  0x33   :  { %109 = vrot.lane.b32.xlu1 %v1520_v3, %s1410_s10  ;;  %64 = vrot.lane.b32.xlu0 %v1520_v3, %s1411_s11 }
  0x37   :  { %151 = vrot.lane.b32.xlu1 %v1502_v1, %s1412_s17  ;;  %149 = vrot.lane.b32.xlu0 %v1493_v0, %s1412_s17 }
  0x3b   :  { %195 = vrot.lane.b32.xlu1 %v1502_v1, %s1413_s18  ;;  %193 = vrot.lane.b32.xlu0 %v1493_v0, %s1413_s18 }
  0x3f   :  { %199 = vrot.lane.b32.xlu1 %v1511_v2, %s1413_s18  ;;  %155 = vrot.lane.b32.xlu0 %v1511_v2, %s1412_s17 }
  0x43   :  { %197 = vrot.lane.b32.xlu1 %v1520_v3, %s1413_s18  ;;  %153 = vrot.lane.b32.xlu0 %v1520_v3, %s1412_s17 }
  0x47   :  { %245 = vrot.lane.b32.xlu1 %v1520_v3, %s1414_s19  ;;  %243 = vrot.lane.b32.xlu0 %v1502_v1, %s1414_s19 }
  0x4b   :  { %247 = vrot.lane.b32.xlu1 %v1511_v2, %s1414_s19  ;;  %241 = vrot.lane.b32.xlu0 %v1493_v0, %s1414_s19 }
  0x4f   :  { %289 = vrot.lane.b32.xlu1 %v1520_v3, %s1415_s20  ;;  %287 = vrot.lane.b32.xlu0 %v1502_v1, %s1415_s20 }
  0x53   :  { %333 = vrot.lane.b32.xlu1 %v1520_v3, %s1416_s21  ;;  %331 = vrot.lane.b32.xlu0 %v1502_v1, %s1416_s21 }
  0x57   :  { %329 = vrot.lane.b32.xlu1 %v1493_v0, %s1416_s21  ;;  %285 = vrot.lane.b32.xlu0 %v1493_v0, %s1415_s20 }
  0x5b   :  { %335 = vrot.lane.b32.xlu1 %v1511_v2, %s1416_s21  ;;  %291 = vrot.lane.b32.xlu0 %v1511_v2, %s1415_s20 }
  0x5f   :  { %377 = vrot.lane.b32.xlu1 %v1520_v3, %s1418_s22  ;;  %375 = vrot.lane.b32.xlu0 %v1502_v1, %s1418_s22 }
  0x63   :  { %379 = vrot.lane.b32.xlu1 %v1511_v2, %s1418_s22  ;;  %373 = vrot.lane.b32.xlu0 %v1493_v0, %s1418_s22 }
  0x99   :  { %v106_v11 = vpop.permute.xlu1 %105  ;;  %v61_v12 = vpop.permute.xlu0 %60 }
  0x9d   :  { %v108_v16 = vpop.permute.xlu1 %107  ;;  %v63_v17 = vpop.permute.xlu0 %62 }
  0x9e   :  { %v116_v20 = vsel %vm113_vm0, %v106_v11, %v108_v16  ;;  %v73_v21 = vsel %vm70_vm1, %v61_v12, %v63_v17 }
  0x9f   :  { %v98_v24 = vmul.f32 %v84_v14, %v73_v21  ;;  %v142_v25 = vmul.f32 %v128_v15, %v116_v20  ;;  %v224_v14 = vrot.slane %v207_v49, %v1588_v19  ;;  %v255_v15 = vld [vmem:[#allocation3 + $0x5] ss:$8 sm:$0xf]  ;;  %v176_v20 = vrot.slane %v163_v48, %v1586_v18 }
  0xa0   :  { %v180_v21 = vrot.slane %v163_v48, %v1588_v19 }
  0xa1   :  { %v112_v26 = vpop.permute.xlu1 %111  ;;  %v67_v27 = vpop.permute.xlu0 %66  ;;  %v1245_v28 = vpack.c.bf16 %v142_v25, %v98_v24  ;;  %v264_v25 = vrot.slane %v255_v15, %v1578_v8 }
  0xa2   :  { %v117_v29 = vsel %vm113_vm0, %v112_v26, %v106_v11  ;;  %v74_v30 = vsel %vm70_vm1, %v67_v27, %v61_v12  ;;  %v220_v12 = vrot.slane %v207_v49, %v1586_v18 }
  0xa3   :  { %v141_v33 = vmul.f32 %v124_v22, %v117_v29  ;;  %v97_v34 = vmul.f32 %v80_v23, %v74_v30  ;;  %1246 = vmatprep.subr.bf16.mxu0 %v1245_v28 }
  0xa5   :  { %v110_v37 = vpop.permute.xlu1 %109  ;;  %v65_v38 = vpop.permute.xlu0 %64  ;;  %v1247_v39 = vpack.c.bf16 %v141_v33, %v97_v34 }
  0xa6   :  { %v114_v40 = vsel %vm113_vm0, %v110_v37, %v112_v26  ;;  %v115_v41 = vsel %vm113_vm0, %v108_v16, %v110_v37  ;;  %v71_v42 = vsel %vm70_vm1, %v65_v38, %v67_v27  ;;  %v72_v43 = vsel %vm70_vm1, %v63_v17, %v65_v38 }
  0xa7   :  { %v143_v44 = vmul.f32 %v132_v31, %v115_v41  ;;  %v99_v45 = vmul.f32 %v88_v35, %v72_v43  ;;  %1248 = vmatpush1.bf16.msra.mxu0 %v1247_v39  ;;  %v100_v46 = vmul.f32 %v92_v36, %v71_v42  ;;  %v144_v47 = vmul.f32 %v136_v32, %v114_v40 }
  0xa8   :  { %v268_v40 = vrot.slane %v255_v15, %v1586_v18  ;;  %v260_v41 = vrot.slane %v255_v15, %v1580_v13  ;;  %v272_v42 = vrot.slane %v255_v15, %v1588_v19 }
  0xa9   :  { %v152_v50 = vpop.permute.xlu1 %151  ;;  %v150_v51 = vpop.permute.xlu0 %149  ;;  %v1261_v52 = vpack.c.bf16 %v144_v47, %v100_v46  ;;  %v1263_v53 = vpack.c.bf16 %v143_v44, %v99_v45 }
  0xaa   :  { %v160_v56 = vsel %vm157_vm2, %v150_v51, %v152_v50 }
  0xab   :  { %1262 = vmatprep.subr.bf16.mxu1 %v1261_v52  ;;  %v186_v60 = vmul.f32 %v172_v54, %v160_v56  ;;  %v299_v52 = vld [vmem:[#allocation3 + $0x6] ss:$8 sm:$0xf] }
  0xac   :  { %1264 = vmatpush1.bf16.msra.mxu1 %v1263_v53  ;;  %v343_v53 = vld [vmem:[#allocation3 + $0x7] ss:$8 sm:$0xf] }
  0xad   :  { %v196_v57 = vpop.permute.xlu1 %195  ;;  %v194_v58 = vpop.permute.xlu0 %193  ;;  %v360_v15 = vrot.slane %v343_v53, %v1588_v19 }
  0xae   :  { %v204_v59 = vsel %vm201_vm3, %v194_v58, %v196_v57 }
  0xaf   :  { %v230_v61 = vmul.f32 %v216_v55, %v204_v59  ;;  %v352_v59 = vrot.slane %v343_v53, %v1578_v8 }
  0xb1   :  { %v200_v5 = vpop.permute.xlu1 %199  ;;  %v156_v6 = vpop.permute.xlu0 %155  ;;  %v1249_v9 = vpack.c.bf16 %v230_v61, %v186_v60 }
  0xb2   :  { %v205_v10 = vsel %vm201_vm3, %v200_v5, %v194_v58  ;;  %v161_v11 = vsel %vm157_vm2, %v156_v6, %v150_v51  ;;  %v308_v58 = vrot.slane %v299_v52, %v1578_v8 }
  0xb3   :  { %v229_v16 = vmul.f32 %v212_v62, %v205_v10  ;;  %v185_v17 = vmul.f32 %v168_v63, %v161_v11  ;;  %1250 = vmatprep.subr.bf16.mxu0 %v1249_v9 }
  0xb5   :  { %v198_v22 = vpop.permute.xlu1 %197  ;;  %v154_v23 = vpop.permute.xlu0 %153  ;;  %v1251_v24 = vpack.c.bf16 %v229_v16, %v185_v17  ;;  %v387_v16 = vld [vmem:[#allocation3 + $0x20] ss:$8 sm:$0xf] }
  0xb6   :  { %v202_v26 = vsel %vm201_vm3, %v198_v22, %v200_v5  ;;  %v203_v27 = vsel %vm201_vm3, %v196_v57, %v198_v22  ;;  %v158_v28 = vsel %vm157_vm2, %v154_v23, %v156_v6  ;;  %v159_v29 = vsel %vm157_vm2, %v152_v50, %v154_v23 }
  0xb7   :  { %v231_v30 = vmul.f32 %v220_v12, %v203_v27  ;;  %v232_v31 = vmul.f32 %v224_v14, %v202_v26  ;;  %v187_v32 = vmul.f32 %v176_v20, %v159_v29  ;;  %v188_v33 = vmul.f32 %v180_v21, %v158_v28  ;;  %1252 = vmatpush1.bf16.msra.mxu0 %v1251_v24 }
  0xb8   :  { %v304_v5 = vrot.slane %v299_v52, %v1580_v13  ;;  %v356_v14 = vrot.slane %v343_v53, %v1586_v18  ;;  %v312_v21 = vrot.slane %v299_v52, %v1586_v18  ;;  %v316_v22 = vrot.slane %v299_v52, %v1588_v19  ;;  %v417_v52 = vld [vmem:[%s1917_s2] sm:$0xff] }
  0xb9   :  { %v246_v34 = vpop.permute.xlu1 %245  ;;  %v244_v35 = vpop.permute.xlu0 %243  ;;  %v1265_v36 = vpack.c.bf16 %v232_v31, %v188_v33  ;;  %v1267_v37 = vpack.c.bf16 %v231_v30, %v187_v32  ;;  %v396_v26 = vrot.slane %v387_v16, %v1578_v8 }
  0xba   :  { %v251_v38 = vsel %vm249_vm4, %v244_v35, %v246_v34 }
  0xbb   :  { %v278_v39 = vmul.f32 %v264_v25, %v251_v38  ;;  %1266 = vmatprep.subr.bf16.mxu1 %v1265_v36 }
  0xbc   :  { %1268 = vmatpush1.bf16.msra.mxu1 %v1267_v37 }
  0xbd   :  { %v248_v43 = vpop.permute.xlu1 %247  ;;  %v242_v44 = vpop.permute.xlu0 %241  ;;  %v1253_v45 = vpack.c.bf16 %v278_v39, %v1502_v1 }
  0xbe   :  { %v250_v46 = vsel %vm249_vm4, %v246_v34, %v248_v43  ;;  %v252_v47 = vsel %vm249_vm4, %v242_v44, %v244_v35  ;;  %v253_v48 = vsel %vm249_vm4, %v248_v43, %v242_v44  ;;  %v404_v43 = vrot.slane %v387_v16, %v1588_v19 }
  0xbf   :  { %v279_v49 = vmul.f32 %v268_v40, %v250_v46  ;;  %v277_v50 = vmul.f32 %v260_v41, %v252_v47  ;;  %v280_v51 = vmul.f32 %v272_v42, %v253_v48  ;;  %1254 = vmatprep.subr.bf16.mxu0 %v1253_v45  ;;  %v400_v41 = vrot.slane %v387_v16, %v1586_v18 }
  0xc0   :  { %v392_v42 = vrot.slane %v387_v16, %v1580_v13 }
  0xc1   :  { %v290_v54 = vpop.permute.xlu1 %289  ;;  %v288_v55 = vpop.permute.xlu0 %287  ;;  %v1255_v1 = vpack.c.bf16 %v277_v50, %v1493_v0  ;;  %v1269_v56 = vpack.c.bf16 %v280_v51, %v1511_v2  ;;  %v1271_v57 = vpack.c.bf16 %v279_v49, %v1520_v3  ;;  %v348_v3 = vrot.slane %v343_v53, %v1580_v13 }
  0xc2   :  { %v295_v60 = vsel %vm293_vm5, %v288_v55, %v290_v54 }
  0xc3   :  { %1256 = vmatpush1.bf16.msra.mxu0 %v1255_v1  ;;  %1270 = vmatprep.subr.bf16.mxu1 %v1269_v56  ;;  %v322_v2 = vmul.f32 %v308_v58, %v295_v60 }
  0xc4   :  { %1272 = vmatpush1.bf16.msra.mxu1 %v1271_v57 }
  0xc5   :  { %v334_v61 = vpop.permute.xlu1 %333  ;;  %v332_v62 = vpop.permute.xlu0 %331 }
  0xc6   :  { %v339_v0 = vsel %vm337_vm6, %v332_v62, %v334_v61 }
  0xc7   :  { %v366_v63 = vmul.f32 %v352_v59, %v339_v0 }
  0xc9   :  { %v330_v6 = vpop.permute.xlu1 %329  ;;  %v286_v9 = vpop.permute.xlu0 %285  ;;  %v1257_v10 = vpack.c.bf16 %v366_v63, %v322_v2 }
  0xca   :  { %v340_v11 = vsel %vm337_vm6, %v330_v6, %v332_v62  ;;  %v296_v12 = vsel %vm293_vm5, %v286_v9, %v288_v55 }
  0xcb   :  { %v365_v17 = vmul.f32 %v348_v3, %v340_v11  ;;  %v321_v20 = vmul.f32 %v304_v5, %v296_v12  ;;  %1258 = vmatprep.subr.bf16.mxu0 %v1257_v10  ;;  %v1419_v11 = vmov 0   ;;  %v634_v12 = vld [vmem:[%s1920_s5] sm:$0xff] }
  0xcc   :  { %1324 = vset.pattern.permute.xlu0 %v1419_v11  ;;  %1325 = vset.pattern.permute.xlu1 %v1419_v11 }
  0xcd   :  { %v336_v23 = vpop.permute.xlu1 %335  ;;  %v292_v24 = vpop.permute.xlu0 %291  ;;  %v1259_v25 = vpack.c.bf16 %v365_v17, %v321_v20  ;;  %v623_v17 = vld [vmem:[%s1919_s4] sm:$0xff] }
  0xce   :  { %v338_v27 = vsel %vm337_vm6, %v334_v61, %v336_v23  ;;  %v341_v28 = vsel %vm337_vm6, %v336_v23, %v330_v6  ;;  %v294_v29 = vsel %vm293_vm5, %v290_v54, %v292_v24  ;;  %v297_v30 = vsel %vm293_vm5, %v292_v24, %v286_v9 }
  0xcf   :  { %v367_v31 = vmul.f32 %v356_v14, %v338_v27  ;;  %v368_v32 = vmul.f32 %v360_v15, %v341_v28  ;;  %v323_v33 = vmul.f32 %v312_v21, %v294_v29  ;;  %v324_v34 = vmul.f32 %v316_v22, %v297_v30  ;;  %1260 = vmatpush1.bf16.msra.mxu0 %v1259_v25 }
  0xd1   :  { %v378_v35 = vpop.permute.xlu1 %377  ;;  %v376_v36 = vpop.permute.xlu0 %375  ;;  %v1273_v37 = vpack.c.bf16 %v368_v32, %v324_v34  ;;  %v1275_v38 = vpack.c.bf16 %v367_v31, %v323_v33 }
  0xd2   :  { %v383_v39 = vsel %vm381_vm7, %v376_v36, %v378_v35 }
  0xd3   :  { %v410_v40 = vmul.f32 %v396_v26, %v383_v39  ;;  %1274 = vmatprep.subr.bf16.mxu1 %v1273_v37 }
  0xd4   :  { %1276 = vmatpush1.bf16.msra.mxu1 %v1275_v38 }
  0xd5   :  { %v380_v44 = vpop.permute.xlu1 %379  ;;  %474 = vmatprep.subr.mxu0 %v410_v40  ;;  %v374_v45 = vpop.permute.xlu0 %373  ;;  %v660_v40 = vld [vmem:[#allocation3] ss:$8 sm:$0xf] }
  0xd6   :  { %v382_v46 = vsel %vm381_vm7, %v378_v35, %v380_v44  ;;  %v384_v47 = vsel %vm381_vm7, %v374_v45, %v376_v36  ;;  %v385_v48 = vsel %vm381_vm7, %v380_v44, %v374_v45  ;;  %v669_v44 = vrot.slane %v660_v40, %v1578_v8 }
  0xd7   :  { %v411_v49 = vmul.f32 %v400_v41, %v382_v46  ;;  %v409_v50 = vmul.f32 %v392_v42, %v384_v47  ;;  %v412_v51 = vmul.f32 %v404_v43, %v385_v48  ;;  %v702_v41 = vld [vmem:[#allocation3 + $0x1] ss:$8 sm:$0xf] }
  0xd8   :  { %v711_v45 = vrot.slane %v702_v41, %v1578_v8 }
  0xd9   :  { %475 = vmatpush1.msra.mxu0 %v409_v50  ;;  %545 = vmatprep.subr.mxu1 %v412_v51 }
  0xda   :  { %1241 = vmatmul.mubr.msk.f32.vlgmr.msra.gmra.mrb[0].mxu0 %vm454_vm8, %v417_v52  ;;  %546 = vmatpush1.msra.mxu1 %v411_v49 }
  0xdb   :  { %1242 = vmatmul.mubr.msk.f32.vlgmr.msra.gmra.mrb[0].mxu1 %vm454_vm8, %v417_v52  ;;  %1092 = vmatprep.mubr.f32.mxu0 %v1417_v4 }
  0xdc   :  { %1163 = vmatprep.mubr.f32.mxu1 %v1417_v4 }
 0x1ad   :  { %v524_v53 = vpop.f32.mrb[0].mxu0 }
 0x1ae   :  { %v526_v54 = vpop.f32.mrb[1].mxu0  ;;  %v595_v55 = vpop.f32.mrb[0].mxu1 }
 0x1af   :  { %v600_v1 = vadd.f32 %v526_v54, %v524_v53  ;;  %v597_v56 = vpop.f32.mrb[1].mxu1 }
 0x1b1   :  { %v601_v57 = vadd.f32 %v600_v1, %v595_v55  ;;  %v707_v1 = vrot.slane %v702_v41, %v1580_v13 }
 0x1b3   :  { %v602_v58 = vadd.f32 %v601_v57, %v597_v56 }
 0x1b5   :  { %603 = vadd.xlane.f32.xlu0 %v602_v58  ;;  %v673_v58 = vrot.slane %v660_v40, %v1586_v18 }
 0x242   :  { %v604_v59 = vpop.xlane.xlu0 %603 }
 0x243   :  { %v606_v60 = vmul.f32 0.001953125, %v604_v59  ;;  %v677_v59 = vrot.slane %v660_v40, %v1588_v19 }
 0x245   :  { %v607_v61 = vsub.f32 %v524_v53, %v606_v60  ;;  %v608_v62 = vsub.f32 %v526_v54, %v606_v60  ;;  %v609_v0 = vsub.f32 %v595_v55, %v606_v60  ;;  %v610_v2 = vsub.f32 %v597_v56, %v606_v60 }
 0x246   :  { %v665_v55 = vrot.slane %v660_v40, %v1580_v13 }
 0x247   :  { %v611_v63 = vmul.f32 %v607_v61, %v607_v61  ;;  %v612_v3 = vmul.f32 %v608_v62, %v608_v62  ;;  %v613_v5 = vmul.f32 %v609_v0, %v609_v0  ;;  %v614_v9 = vmul.f32 %v610_v2, %v610_v2 }
 0x249   :  { %v615_v6 = vadd.f32 %v612_v3, %v611_v63 }
 0x24b   :  { %v616_v4 = vadd.f32 %v615_v6, %v613_v5 }
 0x24d   :  { %v617_v10 = vadd.f32 %v616_v4, %v614_v9 }
 0x24f   :  { %618 = vadd.xlane.f32.xlu1 %v617_v10 }
 0x260   :  { %637 = vperm.xlu1 %1325, %v634_v12  }
 0x2dc   :  { %v619_v14 = vpop.xlane.xlu1 %618 }
 0x2dd   :  { %v620_v15 = vmul.f32 0.001953125, %v619_v14 }
 0x2df   :  { %v621_v16 = vadd.f32 1e-05, %v620_v15 }
 0x2e0   :  { %v638_v23 = vpop.permute.xlu1 %637 }
 0x2e1   :  { %1326 = vrsqrt.f32 %v621_v16  ;;  %v786_v16 = vld [vmem:[#allocation3 + $0x3] ss:$8 sm:$0xf] }
 0x2eb   :  { %v1327_v20 = vpop.eup %1326 }
 0x2ec   :  { %v624_v21 = vmul.f32 %v1327_v20, %v623_v17 }
 0x2ee   :  { %627 = vperm.xlu0 %1324, %v624_v21  }
 0x36d   :  { %v628_v22 = vpop.permute.xlu0 %627 }
 0x36e   :  { %v630_v24 = vmul.f32 %v628_v22, %v607_v61  ;;  %v631_v25 = vmul.f32 %v628_v22, %v608_v62  ;;  %v632_v26 = vmul.f32 %v628_v22, %v609_v0  ;;  %v633_v32 = vmul.f32 %v628_v22, %v610_v2  ;;  %v744_v22 = vld [vmem:[#allocation3 + $0x2] ss:$8 sm:$0xf] }
 0x36f   :  { %v715_v0 = vrot.slane %v702_v41, %v1586_v18  ;;  %v719_v2 = vrot.slane %v702_v41, %v1588_v19 }
 0x370   :  { %v640_v27 = vadd.f32 %v638_v23, %v630_v24  ;;  %v642_v28 = vadd.f32 %v638_v23, %v632_v26  ;;  %v641_v29 = vadd.f32 %v638_v23, %v631_v25  ;;  %v643_v34 = vadd.f32 %v638_v23, %v633_v32 }
 0x371   :  { %v753_v24 = vrot.slane %v744_v22, %v1578_v8  ;;  %v795_v25 = vrot.slane %v786_v16, %v1578_v8 }
 0x372   :  { %v1707_v30 = vmax.f32 %v640_v27, 0.0  ;;  %v1709_v31 = vmax.f32 %v642_v28, 0.0  ;;  %v1715_v33 = vmax.f32 %v641_v29, 0.0  ;;  %v1725_v35 = vmax.f32 %v643_v34, 0.0 }
 0x373   :  { %v749_v29 = vrot.slane %v744_v22, %v1580_v13 }
 0x374   :  { %652 = vrot.lane.b32.xlu0 %v1709_v31, %s1411_s11  ;;  %648 = vrot.lane.b32.xlu1 %v1707_v30, %s1411_s11 }
 0x378   :  { %732 = vrot.lane.b32.xlu0 %v1707_v30, %s1412_s17  ;;  %650 = vrot.lane.b32.xlu1 %v1715_v33, %s1411_s11 }
 0x37c   :  { %774 = vrot.lane.b32.xlu0 %v1707_v30, %s1413_s18  ;;  %690 = vrot.lane.b32.xlu1 %v1707_v30, %s1410_s10 }
 0x380   :  { %738 = vrot.lane.b32.xlu0 %v1725_v35, %s1412_s17  ;;  %692 = vrot.lane.b32.xlu1 %v1715_v33, %s1410_s10 }
 0x384   :  { %736 = vrot.lane.b32.xlu0 %v1709_v31, %s1412_s17  ;;  %654 = vrot.lane.b32.xlu1 %v1725_v35, %s1411_s11 }
 0x388   :  { %822 = vrot.lane.b32.xlu0 %v1715_v33, %s1414_s19  ;;  %696 = vrot.lane.b32.xlu1 %v1725_v35, %s1410_s10 }
 0x38c   :  { %820 = vrot.lane.b32.xlu0 %v1707_v30, %s1414_s19  ;;  %694 = vrot.lane.b32.xlu1 %v1709_v31, %s1410_s10 }
 0x390   :  { %864 = vrot.lane.b32.xlu0 %v1715_v33, %s1415_s20  ;;  %734 = vrot.lane.b32.xlu1 %v1715_v33, %s1412_s17 }
 0x394   :  { %906 = vrot.lane.b32.xlu0 %v1715_v33, %s1416_s21  ;;  %776 = vrot.lane.b32.xlu1 %v1715_v33, %s1413_s18 }
 0x398   :  { %862 = vrot.lane.b32.xlu0 %v1707_v30, %s1415_s20  ;;  %780 = vrot.lane.b32.xlu1 %v1725_v35, %s1413_s18 }
 0x39c   :  { %868 = vrot.lane.b32.xlu0 %v1725_v35, %s1415_s20  ;;  %778 = vrot.lane.b32.xlu1 %v1709_v31, %s1413_s18 }
 0x3a0   :  { %948 = vrot.lane.b32.xlu0 %v1715_v33, %s1418_s22  ;;  %824 = vrot.lane.b32.xlu1 %v1709_v31, %s1414_s19 }
 0x3a4   :  { %946 = vrot.lane.b32.xlu0 %v1707_v30, %s1418_s22  ;;  %826 = vrot.lane.b32.xlu1 %v1725_v35, %s1414_s19 }
 0x3a8   :  { %866 = vrot.lane.b32.xlu1 %v1709_v31, %s1415_s20 }
 0x3ac   :  { %908 = vrot.lane.b32.xlu1 %v1709_v31, %s1416_s21 }
 0x3b0   :  { %904 = vrot.lane.b32.xlu1 %v1707_v30, %s1416_s21 }
 0x3b4   :  { %910 = vrot.lane.b32.xlu1 %v1725_v35, %s1416_s21 }
 0x3b8   :  { %950 = vrot.lane.b32.xlu1 %v1709_v31, %s1418_s22 }
 0x3bc   :  { %952 = vrot.lane.b32.xlu1 %v1725_v35, %s1418_s22 }
 0x3e6   :  { %v653_v36 = vpop.permute.xlu0 %652  ;;  %v649_v37 = vpop.permute.xlu1 %648 }
 0x3ea   :  { %v733_v38 = vpop.permute.xlu0 %732  ;;  %v651_v39 = vpop.permute.xlu1 %650 }
 0x3eb   :  { %v658_v46 = vsel %vm70_vm1, %v649_v37, %v651_v39  ;;  %v657_v63 = vsel %vm70_vm1, %v651_v39, %v653_v36 }
 0x3ec   :  { %v683_v50 = vmul.f32 %v669_v44, %v658_v46  ;;  %v684_v11 = vmul.f32 %v673_v58, %v657_v63  ;;  %v832_v44 = vld [vmem:[#allocation3 + $0x5] ss:$8 sm:$0xf] }
 0x3ee   :  { %v775_v42 = vpop.permute.xlu0 %774  ;;  %v691_v43 = vpop.permute.xlu1 %690 }
 0x3f2   :  { %v739_v47 = vpop.permute.xlu0 %738  ;;  %v693_v48 = vpop.permute.xlu1 %692 }
 0x3f3   :  { %v700_v49 = vsel %vm113_vm0, %v691_v43, %v693_v48 }
 0x3f4   :  { %v725_v51 = vmul.f32 %v711_v45, %v700_v49  ;;  %v757_v45 = vrot.slane %v744_v22, %v1586_v18 }
 0x3f6   :  { %v655_v52 = vpop.permute.xlu1 %654  ;;  %v1277_v53 = vpack.c.bf16 %v725_v51, %v683_v50  ;;  %v737_v54 = vpop.permute.xlu0 %736 }
 0x3f7   :  { %v659_v56 = vsel %vm70_vm1, %v655_v52, %v649_v37  ;;  %v656_v3 = vsel %vm70_vm1, %v653_v36, %v655_v52  ;;  %v791_v36 = vrot.slane %v786_v16, %v1580_v13  ;;  %v743_v37 = vsel %vm157_vm2, %v739_v47, %v733_v38 }
 0x3f8   :  { %1278 = vmatprep.subr.bf16.mxu0 %v1277_v53  ;;  %v682_v61 = vmul.f32 %v665_v55, %v659_v56  ;;  %v685_v12 = vmul.f32 %v677_v59, %v656_v3  ;;  %v766_v49 = vmul.f32 %v749_v29, %v743_v37  ;;  %v740_v50 = vsel %vm157_vm2, %v737_v54, %v739_v47 }
 0x3f9   :  { %v837_v53 = vrot.slane %v832_v44, %v1580_v13  ;;  %v841_v47 = vrot.slane %v832_v44, %v1578_v8 }
 0x3fa   :  { %v697_v57 = vpop.permute.xlu1 %696  ;;  %v823_v5 = vpop.permute.xlu0 %822 }
 0x3fb   :  { %v701_v60 = vsel %vm113_vm0, %v697_v57, %v691_v43  ;;  %v761_v43 = vrot.slane %v744_v22, %v1588_v19 }
 0x3fc   :  { %v724_v62 = vmul.f32 %v707_v1, %v701_v60 }
 0x3fd   :  { %v769_v56 = vmul.f32 %v761_v43, %v740_v50 }
 0x3fe   :  { %v1279_v6 = vpack.c.bf16 %v724_v62, %v682_v61  ;;  %v695_v9 = vpop.permute.xlu1 %694  ;;  %v821_v23 = vpop.permute.xlu0 %820 }
 0x3ff   :  { %v698_v4 = vsel %vm113_vm0, %v695_v9, %v697_v57  ;;  %v699_v10 = vsel %vm113_vm0, %v693_v48, %v695_v9  ;;  %v799_v48 = vrot.slane %v786_v16, %v1586_v18  ;;  %v830_v59 = vsel %vm249_vm4, %v821_v23, %v823_v5 }
 0x400   :  { %v726_v14 = vmul.f32 %v715_v0, %v699_v10  ;;  %v727_v15 = vmul.f32 %v719_v2, %v698_v4  ;;  %1280 = vmatpush1.bf16.msra.mxu0 %v1279_v6  ;;  %v854_v63 = vmul.f32 %v837_v53, %v830_v59  ;;  %v845_v9 = vrot.slane %v832_v44, %v1586_v18 }
 0x401   :  { %v849_v4 = vrot.slane %v832_v44, %v1588_v19 }
 0x402   :  { %v1295_v17 = vpack.c.bf16 %v726_v14, %v684_v11  ;;  %v735_v20 = vpop.permute.xlu1 %734  ;;  %v1293_v21 = vpack.c.bf16 %v727_v15, %v685_v12  ;;  %v1813_v39 = vpop.permute.xlu0 %864  ;;  %v1287_v14 = vpack.c.bf16 %v854_v63, %v1707_v30 }
 0x403   :  { %v742_v26 = vsel %vm157_vm2, %v733_v38, %v735_v20  ;;  %v803_v38 = vrot.slane %v786_v16, %v1588_v19  ;;  %v741_v52 = vsel %vm157_vm2, %v735_v20, %v737_v54  ;;  %v916_v20 = vld [vmem:[#allocation3 + $0x7] ss:$8 sm:$0xf] }
 0x404   :  { %1294 = vmatprep.subr.bf16.mxu1 %v1293_v21  ;;  %v767_v32 = vmul.f32 %v753_v24, %v742_v26  ;;  %v768_v60 = vmul.f32 %v757_v45, %v741_v52  ;;  %v925_v26 = vrot.slane %v916_v20, %v1578_v8 }
 0x405   :  { %1296 = vmatpush1.bf16.msra.mxu1 %v1295_v17 }
 0x406   :  { %v777_v27 = vpop.permute.xlu1 %776  ;;  %v907_v57 = vpop.permute.xlu0 %906 }
 0x407   :  { %v784_v28 = vsel %vm201_vm3, %v775_v42, %v777_v27 }
 0x408   :  { %v809_v34 = vmul.f32 %v795_v25, %v784_v28  ;;  %v874_v25 = vld [vmem:[#allocation3 + $0x6] ss:$8 sm:$0xf] }
 0x409   :  { %v883_v30 = vrot.slane %v874_v25, %v1578_v8  ;;  %v887_v43 = vrot.slane %v874_v25, %v1586_v18 }
 0x40a   :  { %v781_v40 = vpop.permute.xlu1 %780  ;;  %v1281_v41 = vpack.c.bf16 %v809_v34, %v767_v32  ;;  %v863_v10 = vpop.permute.xlu0 %862  ;;  %v921_v32 = vrot.slane %v916_v20, %v1580_v13 }
 0x40b   :  { %v785_v46 = vsel %vm201_vm3, %v781_v40, %v775_v42  ;;  %v872_v34 = vsel %vm293_vm5, %v863_v10, %v1813_v39 }
 0x40c   :  { %v808_v51 = vmul.f32 %v791_v36, %v785_v46  ;;  %1282 = vmatprep.subr.bf16.mxu0 %v1281_v41  ;;  %v891_v41 = vrot.slane %v874_v25, %v1588_v19 }
 0x40e   :  { %v1283_v55 = vpack.c.bf16 %v808_v51, %v766_v49  ;;  %v779_v1 = vpop.permute.xlu1 %778  ;;  %v933_v49 = vrot.slane %v916_v20, %v1588_v19  ;;  %v958_v51 = vld [vmem:[#allocation3 + $0x20] ss:$8 sm:$0xf] }
 0x40f   :  { %v782_v42 = vsel %vm201_vm3, %v779_v1, %v781_v40  ;;  %v783_v58 = vsel %vm201_vm3, %v777_v27, %v779_v1  ;;  %v963_v59 = vrot.slane %v958_v51, %v1580_v13  ;;  %v975_v63 = vrot.slane %v958_v51, %v1588_v19 }
 0x410   :  { %v810_v61 = vmul.f32 %v799_v48, %v783_v58  ;;  %v811_v54 = vmul.f32 %v803_v38, %v782_v42  ;;  %1284 = vmatpush1.bf16.msra.mxu0 %v1283_v55  ;;  %v929_v48 = vrot.slane %v916_v20, %v1586_v18 }
 0x412   :  { %v1299_v62 = vpack.c.bf16 %v810_v61, %v768_v60  ;;  %v825_v0 = vpop.permute.xlu1 %824  ;;  %v1297_v2 = vpack.c.bf16 %v811_v54, %v769_v56  ;;  %v967_v56 = vrot.slane %v958_v51, %v1578_v8  ;;  %v971_v8 = vrot.slane %v958_v51, %v1586_v18  ;;  %v1330_v51 = vld [vmem:[%s1915_s0] sm:$0xff] }
 0x413   :  { %v829_v3 = vsel %vm249_vm4, %v823_v5, %v825_v0 }
 0x414   :  { %v855_v6 = vmul.f32 %v841_v47, %v829_v3  ;;  %1298 = vmatprep.subr.bf16.mxu1 %v1297_v2 }
 0x415   :  { %1300 = vmatpush1.bf16.msra.mxu1 %v1299_v62 }
 0x416   :  { %v827_v11 = vpop.permute.xlu1 %826  ;;  %v1285_v12 = vpack.c.bf16 %v855_v6, %v1715_v33  ;;  %v869_v33 = vpop.permute.xlu0 %868  ;;  %v988_v6 = vld [vmem:[#allocation6] sm:$0xff] }
 0x417   :  { %v828_v15 = vsel %vm249_vm4, %v825_v0, %v827_v11  ;;  %v831_v16 = vsel %vm249_vm4, %v827_v11, %v821_v23 }
 0x418   :  { %v856_v5 = vmul.f32 %v845_v9, %v828_v15  ;;  %v857_v17 = vmul.f32 %v849_v4, %v831_v16  ;;  %1286 = vmatprep.subr.bf16.mxu0 %v1285_v12 }
 0x419   :  { %1288 = vmatpush1.bf16.msra.mxu0 %v1287_v14 }
 0x41a   :  { %v1303_v21 = vpack.c.bf16 %v856_v5, %v1709_v31  ;;  %v867_v22 = vpop.permute.xlu1 %866  ;;  %v1301_v24 = vpack.c.bf16 %v857_v17, %v1725_v35  ;;  %v879_v31 = vrot.slane %v874_v25, %v1580_v13  ;;  %v949_v36 = vpop.permute.xlu0 %948 }
 0x41b   :  { %v871_v23 = vsel %vm293_vm5, %v1813_v39, %v867_v22  ;;  %v873_v39 = vsel %vm293_vm5, %v869_v33, %v863_v10  ;;  %v870_v50 = vsel %vm293_vm5, %v867_v22, %v869_v33 }
 0x41c   :  { %1302 = vmatprep.subr.bf16.mxu1 %v1301_v24  ;;  %v897_v29 = vmul.f32 %v883_v30, %v871_v23  ;;  %v896_v45 = vmul.f32 %v879_v31, %v872_v34  ;;  %v898_v42 = vmul.f32 %v887_v43, %v870_v50  ;;  %v1203_v31 = vld [vmem:[%s1922_s7] sm:$0xff]  ;;  %s1420_s7 = smov [#allocation8]  }
 0x41d   :  { %1304 = vmatpush1.bf16.msra.mxu1 %v1303_v21  ;;  %v1192_v34 = vld [vmem:[%s1921_s6] sm:$0xff]  ;;  %s1231_s28 = sshll.u32 %s1420_s7, 4  ;;  %s1232_s28 = int_to_ptr.vmem [resolvable:$true] %s1231_s28 }
 0x41e   :  { %v909_v27 = vpop.permute.xlu1 %908  ;;  %v947_v53 = vpop.permute.xlu0 %946  ;;  %s1378_s14 = scalar_lea.vmem %s1232_s28, 512  ;;  %p1383_p3 = scmp.lt.s32.totalorder %s1232_s28, %s1232_s28 }
 0x41f   :  { %v913_v28 = vsel %vm337_vm6, %v907_v57, %v909_v27  ;;  %v956_v60 = vsel %vm381_vm7, %v947_v53, %v949_v36  ;;  %p1379_p2 = scmp.ne.s32.totalorder %s1232_s28, %s1378_s14  ;;  %p1384_p4 = scmp.lt.s32.totalorder %s1378_s14, %s1378_s14 }
 0x420   :  { %v939_v35 = vmul.f32 %v925_v26, %v913_v28  ;;  %v980_v3 = vmul.f32 %v963_v59, %v956_v60 }
 0x421   :  { %p1385_p5 = por %p1384_p4, %p1383_p3 }
 0x422   :  { %v905_v37 = vpop.permute.xlu1 %904  ;;  %v1289_v40 = vpack.c.bf16 %v939_v35, %v897_v29 }
 0x423   :  { %v914_v44 = vsel %vm337_vm6, %v905_v37, %v907_v57  ;;  %v899_v57 = vmul.f32 %v891_v41, %v873_v39  ;;  %p1386_p6 = pnand %p1385_p5, %p1379_p2 }
 0x424   :  { %v938_v46 = vmul.f32 %v921_v32, %v914_v44  ;;  %1290 = vmatprep.subr.bf16.mxu0 %v1289_v40 }
 0x426   :  { %v1291_v38 = vpack.c.bf16 %v938_v46, %v896_v45  ;;  %v911_v52 = vpop.permute.xlu1 %910 }
 0x427   :  { %v912_v55 = vsel %vm337_vm6, %v909_v27, %v911_v52  ;;  %v915_v1 = vsel %vm337_vm6, %v911_v52, %v905_v37  ;;  %v1331_v52 = vld [vmem:[%s1915_s0 + $0x8] sm:$0xff] }
 0x428   :  { %v940_v58 = vmul.f32 %v929_v48, %v912_v55  ;;  %v941_v47 = vmul.f32 %v933_v49, %v915_v1  ;;  %1292 = vmatpush1.bf16.msra.mxu0 %v1291_v38  ;;  %v1332_v55 = vld [vmem:[%s1915_s0 + $0x10] sm:$0xff] }
 0x42a   :  { %v1307_v61 = vpack.c.bf16 %v940_v58, %v898_v42  ;;  %v951_v54 = vpop.permute.xlu1 %950  ;;  %v1305_v62 = vpack.c.bf16 %v941_v47, %v899_v57 }
 0x42b   :  { %v955_v0 = vsel %vm381_vm7, %v949_v36, %v951_v54 }
 0x42c   :  { %v981_v2 = vmul.f32 %v967_v56, %v955_v0  ;;  %1306 = vmatprep.subr.bf16.mxu1 %v1305_v62  ;;  %v1333_v56 = vld [vmem:[%s1915_s0 + $0x18] sm:$0xff] }
 0x42d   :  { %1308 = vmatpush1.bf16.msra.mxu1 %v1307_v61 }
 0x42e   :  { %1044 = vmatprep.subr.mxu0 %v981_v2  ;;  %v953_v13 = vpop.permute.xlu1 %952 }
 0x42f   :  { %v954_v9 = vsel %vm381_vm7, %v951_v54, %v953_v13  ;;  %v957_v4 = vsel %vm381_vm7, %v953_v13, %v947_v53  ;;  %1045 = vmatpush1.msra.mxu0 %v980_v3 }
 0x430   :  { %v982_v10 = vmul.f32 %v971_v8, %v954_v9  ;;  %v983_v11 = vmul.f32 %v975_v63, %v957_v4  ;;  %1243 = vmatmul.mubr.msk.f32.vlgmr.msra.gmra.mrb[2].mxu0 %vm454_vm8, %v988_v6 }
 0x432   :  { %1115 = vmatprep.subr.mxu1 %v983_v11 }
 0x433   :  { %1116 = vmatpush1.msra.mxu1 %v982_v10 }
 0x434   :  { %1244 = vmatmul.mubr.msk.f32.vlgmr.msra.gmra.mrb[2].mxu1 %vm454_vm8, %v988_v6 }
 0x503   :  { %v1094_v18 = vpop.f32.mrb[2].mxu0 }
 0x504   :  { %v1096_v19 = vpop.f32.mrb[3].mxu0 }
 0x505   :  { %v1170_v12 = vadd.f32 %v1096_v19, %v1094_v18 }
 0x507   :  { %v1165_v14 = vpop.f32.mrb[2].mxu1 }
 0x508   :  { %v1171_v15 = vadd.f32 %v1170_v12, %v1165_v14  ;;  %v1167_v16 = vpop.f32.mrb[3].mxu1 }
 0x50a   :  { %v1172_v5 = vadd.f32 %v1171_v15, %v1167_v16 }
 0x50c   :  { %1173 = vadd.xlane.f32.xlu0 %v1172_v5 }
 0x599   :  { %v1174_v17 = vpop.xlane.xlu0 %1173 }
 0x59a   :  { %v1175_v7 = vmul.f32 0.001953125, %v1174_v17 }
 0x59c   :  { %v1176_v20 = vsub.f32 %v1094_v18, %v1175_v7  ;;  %v1177_v21 = vsub.f32 %v1096_v19, %v1175_v7  ;;  %v1178_v22 = vsub.f32 %v1165_v14, %v1175_v7  ;;  %v1179_v24 = vsub.f32 %v1167_v16, %v1175_v7 }
 0x59e   :  { %v1180_v25 = vmul.f32 %v1176_v20, %v1176_v20  ;;  %v1181_v33 = vmul.f32 %v1177_v21, %v1177_v21  ;;  %v1182_v30 = vmul.f32 %v1178_v22, %v1178_v22  ;;  %v1183_v23 = vmul.f32 %v1179_v24, %v1179_v24 }
 0x5a0   :  { %v1184_v26 = vadd.f32 %v1181_v33, %v1180_v25 }
 0x5a2   :  { %v1185_v27 = vadd.f32 %v1184_v26, %v1182_v30 }
 0x5a4   :  { %v1186_v28 = vadd.f32 %v1185_v27, %v1183_v23 }
 0x5a6   :  { %1187 = vadd.xlane.f32.xlu1 %v1186_v28 }
 0x5b7   :  { %1206 = vperm.xlu1 %1325, %v1203_v31  }
 0x633   :  { %v1188_v29 = vpop.xlane.xlu1 %1187 }
 0x634   :  { %v1189_v35 = vmul.f32 0.001953125, %v1188_v29 }
 0x636   :  { %v1190_v32 = vadd.f32 1e-05, %v1189_v35 }
 0x637   :  { %v1207_v46 = vpop.permute.xlu1 %1206 }
 0x638   :  { %1328 = vrsqrt.f32 %v1190_v32 }
 0x642   :  { %v1329_v36 = vpop.eup %1328 }
 0x643   :  { %v1193_v37 = vmul.f32 %v1329_v36, %v1192_v34 }
 0x645   :  { %1196 = vperm.xlu0 %1324, %v1193_v37  }
 0x6c4   :  { %v1197_v40 = vpop.permute.xlu0 %1196 }
 0x6c5   :  { %v1199_v41 = vmul.f32 %v1197_v40, %v1176_v20  ;;  %v1200_v43 = vmul.f32 %v1197_v40, %v1177_v21  ;;  %v1201_v44 = vmul.f32 %v1197_v40, %v1178_v22  ;;  %v1202_v45 = vmul.f32 %v1197_v40, %v1179_v24 }
 0x6c7   :  { %v1209_v48 = vadd.f32 %v1207_v46, %v1199_v41  ;;  %v1210_v49 = vadd.f32 %v1207_v46, %v1200_v43  ;;  %v1211_v39 = vadd.f32 %v1207_v46, %v1201_v44  ;;  %v1212_v50 = vadd.f32 %v1207_v46, %v1202_v45 }
 0x6c9   :  { %v1213_v38 = vadd.f32 %v1330_v51, %v1209_v48  ;;  %v1214_v53 = vadd.f32 %v1331_v52, %v1210_v49  ;;  %v1215_v1 = vadd.f32 %v1332_v55, %v1211_v39  ;;  %v1216_v57 = vadd.f32 %v1333_v56, %v1212_v50 }
 0x6cb   :  { %v1217_v42 = vmax.f32 %v1213_v38, 0.0  ;;  %v1218_v58 = vmax.f32 %v1214_v53, 0.0  ;;  %v1219_v47 = vmax.f32 %v1215_v1, 0.0  ;;  %v1220_v59 = vmax.f32 %v1216_v57, 0.0 }
 0x6cd   :  { %1221 = vst [vmem:[#allocation8] sm:$0xff] %v1217_v42  ;;  %1222 = vst [vmem:[#allocation8 + $0x8] sm:$0xff] %v1218_v58 }
 0x6ce   :  { %1223 = vst [vmem:[#allocation8 + $0x10] sm:$0xff] %v1219_v47  ;;  %1224 = vst [vmem:[#allocation8 + $0x18] sm:$0xff] %v1220_v59 }
 0x6cf   :  { %1389 = shalt.err (!%p1386_p6)
}
 0x6d0   :  { %s1390_s0 = scalar_lea.hbm %s1923_s8, 512 }
 0x6d1   :  { %p1391_p7 = scmp.ne.s32.totalorder %s1923_s8, %s1390_s0  ;;  %p1394_p8 = scmp.lt.u32.totalorder %s1390_s0, %s1923_s8 }
 0x6d3   :  { %p1396_p9 = pnand %p1394_p8, %p1391_p7 }
 0x6d5   :  { %1399 = shalt.err (!%p1396_p9)
}
 0x6d6   :  { %1234 = dma.vmem_to_hbm [thread:$0]  %s1232_s28, 512, %s1923_s8, [#allocation5]  }
 0x6d7   :  { %1404 = dma.done.wait [#allocation5], 512  }
 0x6d8   :  { %1405 = vsyncadd [#allocation5], 4294966784 }
 0x6d9   :  { %1238 = vsyncpa [#allocation4], 1 }
 0x6da   :  { %1239 = vsyncpa [#allocation7], 1 }
 0x6db   :  { %1240 = vsyncpa [#allocation5], 1 }

</bundles_post_ra>
